<compile_context>
chip_gen: v5e
topology: v5e:2x2
jax: 0.10.0
libtpu: 0.0.40
codegen_flags: <defaults>
</compile_context>

<pallas_src>
import functools

import jax
import jax.numpy as jnp
from jax import lax
from jax.experimental import pallas as pl
from jax.experimental.pallas import tpu as pltpu

_CUBIC_A = -0.75  # PyTorch's bicubic convolution constant.


def _bicubic_interp_matrix(src_len: int, dst_len: int) -> jnp.ndarray:
    """W (src_len, dst_len) s.t. v @ W reproduces PyTorch's 1-D cubic pass of
    F.interpolate(..., mode='bicubic', align_corners=True)."""
    a = _CUBIC_A
    scale = (src_len - 1) / (dst_len - 1) if dst_len > 1 else 0.0
    j = jnp.arange(dst_len, dtype=jnp.float32)
    r = j * scale                       # align_corners=True source coordinate
    i0 = jnp.floor(r)
    t = r - i0
    i0 = i0.astype(jnp.int32)

    def cubic1(x):      # |x| <= 1
        return ((a + 2.0) * x - (a + 3.0)) * x * x + 1.0

    def cubic2(x):      # 1 < |x| < 2
        return ((a * x - 5.0 * a) * x + 8.0 * a) * x - 4.0 * a

    taps = (
        (-1, cubic2(t + 1.0)),
        (0, cubic1(t)),
        (1, cubic1(1.0 - t)),
        (2, cubic2(2.0 - t)),
    )
    w = jnp.zeros((src_len, dst_len), jnp.float32)
    for off, coeff in taps:
        idx = jnp.clip(i0 + off, 0, src_len - 1)   # border-replicated taps
        w = w + jax.nn.one_hot(idx, src_len, dtype=jnp.float32).T * coeff[None, :]
    return w


def _dropout(out, seed_ref, p_drop):
    """Inverted dropout with the on-chip PRNG (distinct stream per grid step)."""
    step = pl.program_id(0) * pl.num_programs(1) + pl.program_id(1)
    pltpu.prng_seed(seed_ref[0] + step)
    bits = pltpu.bitcast(pltpu.prng_random_bits(out.shape), jnp.int32)
    u24 = jnp.bitwise_and(bits, (1 << 24) - 1)        # uniform in [0, 2^24)
    # int() truncation shifts the keep-probability by < 6e-8 -- negligible.
    keep = u24 >= int(p_drop * float(1 << 24))
    return jnp.where(keep, out * (1.0 / (1.0 - p_drop)), 0.0)


# ----------------------------- kernels ------------------------------------ #

def _kron_kernel(seed_ref, x_ref, k_ref, o_ref, *, p_drop, training):
    # x_ref: (1, CB, H*W)   k_ref: (H*W, Ho*Wo) bf16   o_ref: (1, CB, Ho*Wo)
    x = x_ref[0].astype(jnp.bfloat16)
    out = jnp.dot(x, k_ref[...], preferred_element_type=jnp.float32)
    if training and p_drop > 0.0:
        out = _dropout(out, seed_ref, p_drop)
    o_ref[0] = out.astype(o_ref.dtype)


def _separable_kernel(seed_ref, x_ref, wh_ref, ww_ref, o_ref, *, p_drop, training):
    # x_ref: (1, CB, H, W)   wh_ref: (Ho, H) bf16   ww_ref: (W, Wo) bf16
    # o_ref: (1, CB, Ho, Wo)
    x = x_ref[0].astype(jnp.bfloat16)                   # (CB, H, W)
    cb, h, w = x.shape
    wo = ww_ref.shape[1]
    # Width pass: one large flat matmul (CB*H, W) @ (W, Wo).
    t = jnp.dot(x.reshape(cb * h, w), ww_ref[...],
                preferred_element_type=jnp.float32)
    t = t.reshape(cb, h, wo).astype(jnp.bfloat16)
    # Height pass: contract H with NO batch dims: (Ho,H) x (CB,H,Wo) -> (Ho,CB,Wo).
    out = lax.dot_general(wh_ref[...], t,
                          dimension_numbers=(((1,), (1,)), ((), ())),
                          preferred_element_type=jnp.float32)
    out = jnp.transpose(out, (1, 0, 2))                 # (CB, Ho, Wo) sublane shuffle
    if training and p_drop > 0.0:
        out = _dropout(out, seed_ref, p_drop)
    o_ref[0] = out.astype(o_ref.dtype)


# -------------------------- VMEM-aware tiling ------------------------------ #

def _pad_tile_bytes(rows, cols, itemsize):
    """Bytes of a (rows, cols) VMEM tile after (sublane, 128-lane) padding."""
    sub = {4: 8, 2: 16, 1: 32}.get(itemsize, 8)
    return (-(-rows // sub) * sub) * (-(-cols // 128) * 128) * itemsize


def _tpu_vmem_bytes():
    try:
        return int(pltpu.get_tpu_info().vmem_capacity_bytes)
    except Exception:                     # unknown chip / interpret mode
        return 64 * 1024 * 1024           # conservative (v7x per-TC VMEM)


def _pick_cb_kron(b, c, hw, howo, itemsize, budget):
    # Keep both v7x TensorCores busy even when batch == 1.
    max_cb = -(-c // 2) if (b == 1 and c > 1) else c

    def cost(cb):
        inp = _pad_tile_bytes(cb, hw, itemsize)          # double-buffered input
        out = _pad_tile_bytes(cb, howo, itemsize)        # double-buffered output
        tmp = _pad_tile_bytes(cb, hw, 2) + _pad_tile_bytes(cb, howo, 4)
        return 2 * inp + 2 * out + tmp

    # (8,128) rule: a partial channel block must be a multiple of 8 sublanes
    # (or the full channel extent).
    cands = [v for v in range(1, max_cb + 1) if v == c or v % 8 == 0]
    if not cands:
        return c
    fit = [v for v in cands if cost(v) <= budget]
    return max(fit) if fit else min(cands)


def _pick_cb_sep(b, c, h, w, ho, wo, itemsize, budget):
    max_cb = -(-c // 2) if (b == 1 and c > 1) else c

    def cost(cb):
        inp = cb * _pad_tile_bytes(h, w, itemsize)
        out = cb * _pad_tile_bytes(ho, wo, itemsize)
        tmp = (_pad_tile_bytes(cb * h, wo, 4) + _pad_tile_bytes(cb * h, wo, 2)
               + 2 * _pad_tile_bytes(cb * ho, wo, 4)
               + cb * _pad_tile_bytes(h, w, 2))
        return 2 * inp + 2 * out + tmp

    cb = max_cb
    while cb > 1 and cost(cb) > budget:
        cb -= 1
    return cb


# ------------------------------ wrapper ------------------------------------ #

@functools.partial(jax.jit, static_argnames=("scale", "p_drop", "training"))
def upsample_bicubic_dropout(x, seed=0, *, scale=2, p_drop=0.2, training=False):
    """x: (B, C, H, W) -> (B, C, scale*H, scale*W). Matches Upsample_.forward."""
    b, c, h, w = x.shape
    ho, wo = scale * h, scale * w
    itemsize = x.dtype.itemsize
    seed_arr = jnp.reshape(jnp.asarray(seed, dtype=jnp.int32), (1,))

    mh = _bicubic_interp_matrix(h, ho)         # (H, Ho)
    mw = _bicubic_interp_matrix(w, wo)         # (W, Wo)

    vmem_cap = _tpu_vmem_bytes()
    vmem_limit = int(0.70 * vmem_cap)          # v7x: ~45 MiB, v5e/v6e: ~90 MiB
    block_budget = int(0.45 * vmem_cap)

    compiler_params = pltpu.CompilerParams(
        dimension_semantics=("parallel", "parallel"),
        vmem_limit_bytes=vmem_limit)

    kron_bytes = 2 * _pad_tile_bytes(h * w, ho * wo, 2)   # double-buffered bf16 K
    use_kron = kron_bytes <= 8 * 1024 * 1024

    if use_kron:
        # Fused path: one lane-dense matmul per grid step, lane-dense output.
        hw, howo = h * w, ho * wo
        k_mat = jnp.kron(mh, mw).astype(jnp.bfloat16)      # (H*W, Ho*Wo)
        cb = _pick_cb_kron(b, c, hw, howo, itemsize, block_budget - kron_bytes)
        n_cb = pl.cdiv(c, cb)
        kernel = functools.partial(_kron_kernel, p_drop=float(p_drop),
                                   training=bool(training))
        out_flat = pl.pallas_call(
            kernel,
            out_shape=jax.ShapeDtypeStruct((b, c, howo), x.dtype),
            grid_spec=pltpu.PrefetchScalarGridSpec(
                num_scalar_prefetch=1,
                grid=(b, n_cb),
                in_specs=[
                    pl.BlockSpec((1, cb, hw), lambda bi, ci, s: (bi, ci, 0)),
                    pl.BlockSpec((hw, howo), lambda bi, ci, s: (0, 0)),
                ],
                out_specs=pl.BlockSpec((1, cb, howo),
                                       lambda bi, ci, s: (bi, ci, 0)),
            ),
            compiler_params=compiler_params,
        )(seed_arr, x.reshape(b, c, hw), k_mat)
        return out_flat.reshape(b, c, ho, wo)

    # Large images: separable two-matmul path (Wo >= 128 here, so the NCHW
    # output block is already lane-dense).
    wh = mh.T.astype(jnp.bfloat16)             # (Ho, H)
    ww = mw.astype(jnp.bfloat16)               # (W, Wo)
    w_bytes = 2 * (_pad_tile_bytes(ho, h, 2) + _pad_tile_bytes(w, wo, 2))
    cb = _pick_cb_sep(b, c, h, w, ho, wo, itemsize, block_budget - w_bytes)
    n_cb = pl.cdiv(c, cb)
    kernel = functools.partial(_separable_kernel, p_drop=float(p_drop),
                               training=bool(training))
    return pl.pallas_call(
        kernel,
        out_shape=jax.ShapeDtypeStruct((b, c, ho, wo), x.dtype),
        grid_spec=pltpu.PrefetchScalarGridSpec(
            num_scalar_prefetch=1,
            grid=(b, n_cb),
            in_specs=[
                pl.BlockSpec((1, cb, h, w), lambda bi, ci, s: (bi, ci, 0, 0)),
                pl.BlockSpec((ho, h), lambda bi, ci, s: (0, 0)),
                pl.BlockSpec((w, wo), lambda bi, ci, s: (0, 0)),
            ],
            out_specs=pl.BlockSpec((1, cb, ho, wo),
                                   lambda bi, ci, s: (bi, ci, 0, 0)),
        ),
        compiler_params=compiler_params,
    )(seed_arr, x, wh, ww)


if __name__ == "__main__":
    # Upsample_(scale=2) on a small NCHW tensor.
    B, C, H, W = 2, 4, 16, 16
    SCALE = 2

    key = jax.random.PRNGKey(0)
    x = jax.random.normal(key, (B, C, H, W), dtype=jnp.float32)

    # Inference-mode forward (Dropout(0.2) is identity in eval mode).
    out = upsample_bicubic_dropout(x, 0, scale=SCALE, p_drop=0.2, training=False)
    jax.block_until_ready(out)

    # Pure-JAX f32 reference with identical bicubic (align_corners=True) semantics.
    wh = _bicubic_interp_matrix(H, SCALE * H).T       # (Ho, H)
    ww = _bicubic_interp_matrix(W, SCALE * W)         # (W, Wo)
    tmp = jnp.einsum("bchw,wv->bchv", x, ww, precision=lax.Precision.HIGHEST)
    ref = jnp.einsum("oh,bchv->bcov", wh, tmp, precision=lax.Precision.HIGHEST)

    assert out.shape == (B, C, SCALE * H, SCALE * W)
    # Tolerance reflects the deliberate bf16 MXU feed (f32 accumulate), not an
    # indexing/structure error margin (those would be O(1)).
    assert jnp.allclose(out, ref, atol=5e-2, rtol=5e-2), float(
        jnp.max(jnp.abs(out - ref)))

    print("KERNEL_OK")
</pallas_src>

<mosaic_0001>
module attributes {stable_mosaic.version = 11 : i64} {
  func.func @_kron_kernel(%arg0: i32, %arg1: i32, %arg2: memref<1xi32, #tpu.memory_space<smem>>, %arg3: memref<1x4x256xf32, #tpu.memory_space<vmem>>, %arg4: memref<256x1024xbf16, #tpu.memory_space<vmem>>, %arg5: memref<1x4x1024xf32, #tpu.memory_space<vmem>>) attributes {dimension_semantics = [#tpu.dimension_semantics<parallel>, #tpu.dimension_semantics<parallel>], iteration_bounds = array<i64: 2, 1>, scalar_prefetch = 1 : i64, scratch_operands = 0 : i64, tpu.core_type = #tpu.core_type<tc>, window_params = [{transform_indices = @transform_0, window_bounds = array<i64: 1, 4, 256>}, {pipeline_mode = #tpu.pipeline_mode<synchronous>, transform_indices = @transform_1, window_bounds = array<i64: 256, 1024>}, {transform_indices = @transform_2, window_bounds = array<i64: 1, 4, 1024>}]} {
    %c0 = arith.constant 0 : index
    %c0_0 = arith.constant 0 : index
    %c0_1 = arith.constant 0 : index
    %0 = vector.load %arg3[%c0, %c0_0, %c0_1] : memref<1x4x256xf32, #tpu.memory_space<vmem>>, vector<1x4x256xf32>
    %1 = vector.shape_cast %0 : vector<1x4x256xf32> to vector<4x256xf32>
    %2 = arith.truncf %1 : vector<4x256xf32> to vector<4x256xbf16>
    %c0_2 = arith.constant 0 : index
    %c0_3 = arith.constant 0 : index
    %3 = vector.load %arg4[%c0_2, %c0_3] : memref<256x1024xbf16, #tpu.memory_space<vmem>>, vector<256x1024xbf16>
    %cst = arith.constant dense<0.000000e+00> : vector<4x1024xf32>
    %4 = tpu.matmul %2, %3, %cst {dimension_numbers = #tpu.dot_dimension_numbers<[1], [0], [0], [1], [0, 0, 1, 1], [], []>} : vector<4x256xbf16>, vector<256x1024xbf16>, vector<4x1024xf32> -> vector<4x1024xf32>
    %c0_4 = arith.constant 0 : index
    %c0_5 = arith.constant 0 : index
    %c0_6 = arith.constant 0 : index
    %5 = vector.load %arg5[%c0_4, %c0_5, %c0_6] : memref<1x4x1024xf32, #tpu.memory_space<vmem>>, vector<1x4x1024xf32>
    %6 = vector.shape_cast %5 : vector<1x4x1024xf32> to vector<4x1024xf32>
    %7 = vector.shape_cast %4 : vector<4x1024xf32> to vector<1x4x1024xf32>
    tpu.vector_store %arg5[%c0_4, %c0_5, %c0_6], %7 {strides = array<i32>} : memref<1x4x1024xf32, #tpu.memory_space<vmem>>, vector<1x4x1024xf32>,
    return
  }
  func.func @transform_0(%arg0: i32, %arg1: i32, %arg2: memref<1xi32, #tpu.memory_space<smem>>) -> (i32, i32, i32) {
    %c0_i32 = arith.constant 0 : i32
    %c0_i32_0 = arith.constant 0 : i32
    return %arg0, %arg1, %c0_i32 : i32, i32, i32
  }
  func.func @transform_1(%arg0: i32, %arg1: i32, %arg2: memref<1xi32, #tpu.memory_space<smem>>) -> (i32, i32) {
    %c0_i32 = arith.constant 0 : i32
    %c0_i32_0 = arith.constant 0 : i32
    %c0_i32_1 = arith.constant 0 : i32
    return %c0_i32, %c0_i32_0 : i32, i32
  }
  func.func @transform_2(%arg0: i32, %arg1: i32, %arg2: memref<1xi32, #tpu.memory_space<smem>>) -> (i32, i32, i32) {
    %c0_i32 = arith.constant 0 : i32
    %c0_i32_0 = arith.constant 0 : i32
    return %arg0, %arg1, %c0_i32 : i32, i32, i32
  }
}

</mosaic_0001>

<bundles_post_ra>
// kernel: upsample_bicubic_dropout.1
= control target key start
LH: loop header
LB: loop body
LE: loop exit
PB: predicated region body
PF: predicated region fallthrough
CT: control target
= control target key end

     0   :  { %s2005_s12 = smov 0   ;;  %s2007_s13 = smov 0   ;;  %s2844_s0 = inlined_call_operand.<no memory space> [shape: s32[1], index: 0, kind: input, shape index: {}]   ;;  %s2845_s1 = inlined_call_operand.vmem [shape: f32[2,4,256], index: 1, kind: input, shape index: {}]   ;;  %s2846_s2 = inlined_call_operand.vmem [shape: bf16[256,1024], index: 2, kind: input, shape index: {}]   ;;  %s2847_s3 = inlined_call_operand.vmem [shape: f32[2,4,1024], index: 3, kind: output, shape index: {}]  }
   0x1   :  { %s2009_s14 = smov 0  }
   0x2 LB: > { %s26_s0 = sadd.s32 1, %s1979_s13  ;;  %p1288_p0 = scmp.ge.s32.totalorder %s1983_s14, 1  ;;  %s1983_s14 = sphi %s2009_s14, %s14_s14   ;;  %s1979_s13 = sphi %s2007_s13, %s2849_s13   ;;  %s1975_s12 = sphi %s2005_s12, %s2848_s12  }
   0x3   : > { %p28_p1 = scmp.ge.s32.totalorder %s26_s0, 2  ;;  %p134_p2 = scmp.lt.s32.totalorder %s1983_s14, 3 }
   0x5   : > { %s2851_s0 = smov (%p28_p1, %s26_s0), 0  ;;  %p135_p3 = pnand %p1288_p0, %p134_p2 }
   0x6   : > { %p164_p4 = scmp.lt.s32.totalorder (!%p135_p3), %s1975_s12, 1 }
   0x7   : > { %138 = sbr.rel (%p135_p3) target bundleno = 285 (0x11d), region = 28 }
   0xc   : > { %v1519_v0 = vld [vmem:[%s2846_s2 + $0x1c0] sm:$0xf]  ;;  %v1865_v5 = vld [vmem:[%s2846_s2 + $0x1c4] sm:$0xf]  ;;  %s2853_s12 = smov (!%p164_p4, %s1975_s12), 1  ;;  %vm1179_vm0 = vcmask 1043456  }
   0xd   : > { %v1869_v1 = vld [vmem:[%s2846_s2 + $0x1dc] sm:$0xf0]  ;;  %v1521_v6 = vld [vmem:[%s2846_s2 + $0x1e0] sm:$0xf0]  ;;  %s1807_s17 = sshll.u32 %s2853_s12, 3  ;;  %s1808_s27 = sshll.u32 %s2853_s12, 5 }
   0xe   : > { %v1775_v2 = vld [vmem:[%s2846_s2 + $0x3c0] sm:$0xf]  ;;  %v1520_v3 = vor.u32 %v1869_v1, %v1519_v0  ;;  %v1524_v8 = vor.u32 %v1865_v5, %v1521_v6  ;;  %v1929_v9 = vld [vmem:[%s2846_s2 + $0x3c4] sm:$0xf]  ;;  %s172_s26 = scalar_lea.vmem %s2845_s1, %s1807_s17  ;;  %s2825_s30 = scalar_lea.vmem %s2847_s3, %s1808_s27 }
   0xf   : > { %v1933_v4 = vld [vmem:[%s2846_s2 + $0x3dc] sm:$0xf0]  ;;  %v1777_v10 = vld [vmem:[%s2846_s2 + $0x3e0] sm:$0xf0] }
  0x10   : > { %v1776_v7 = vor.u32 %v1933_v4, %v1775_v2  ;;  %v1487_v11 = vld [vmem:[%s2846_s2 + $0x180] sm:$0xf]  ;;  %959 = vmatpush.bf16.msra.mxu0 %v1520_v3  ;;  %v1780_v12 = vor.u32 %v1929_v9, %v1777_v10  ;;  %985 = vmatpush.bf16.msra.mxu2 %v1524_v8  ;;  %v1857_v18 = vld [vmem:[%s2846_s2 + $0x184] sm:$0xf] }
  0x11   : > { %v1861_v13 = vld [vmem:[%s2846_s2 + $0x19c] sm:$0xf0]  ;;  %v1489_v19 = vld [vmem:[%s2846_s2 + $0x1a0] sm:$0xf0] }
  0x12   : > { %v1743_v14 = vld [vmem:[%s2846_s2 + $0x380] sm:$0xf]  ;;  %972 = vmatpush.bf16.msra.mxu1 %v1776_v7  ;;  %v1488_v16 = vor.u32 %v1861_v13, %v1487_v11  ;;  %v1921_v20 = vld [vmem:[%s2846_s2 + $0x384] sm:$0xf]  ;;  %998 = vmatpush.bf16.msra.mxu3 %v1780_v12  ;;  %v1492_v21 = vor.u32 %v1857_v18, %v1489_v19 }
  0x13   : > { %v1925_v15 = vld [vmem:[%s2846_s2 + $0x39c] sm:$0xf0]  ;;  %v1745_v22 = vld [vmem:[%s2846_s2 + $0x3a0] sm:$0xf0] }
  0x14   : > { %v1744_v17 = vor.u32 %v1925_v15, %v1743_v14  ;;  %v1455_v23 = vld [vmem:[%s2846_s2 + $0x140] sm:$0xf]  ;;  %v1748_v25 = vor.u32 %v1921_v20, %v1745_v22  ;;  %v1849_v28 = vld [vmem:[%s2846_s2 + $0x144] sm:$0xf]  ;;  %960 = vmatpush.bf16.msra.mxu0 %v1488_v16  ;;  %986 = vmatpush.bf16.msra.mxu2 %v1492_v21 }
  0x15   : > { %v1853_v24 = vld [vmem:[%s2846_s2 + $0x15c] sm:$0xf0]  ;;  %v1457_v30 = vld [vmem:[%s2846_s2 + $0x160] sm:$0xf0] }
  0x16   : > { %v1711_v26 = vld [vmem:[%s2846_s2 + $0x340] sm:$0xf]  ;;  %v1456_v29 = vor.u32 %v1853_v24, %v1455_v23  ;;  %v1913_v31 = vld [vmem:[%s2846_s2 + $0x344] sm:$0xf]  ;;  %973 = vmatpush.bf16.msra.mxu1 %v1744_v17  ;;  %v1460_v34 = vor.u32 %v1849_v28, %v1457_v30  ;;  %999 = vmatpush.bf16.msra.mxu3 %v1748_v25  ;;  %v1527_v28 = vld [vmem:[%s2846_s2 + $0x1c8] sm:$0xf] }
  0x17   : > { %v1917_v27 = vld [vmem:[%s2846_s2 + $0x35c] sm:$0xf0]  ;;  %v1713_v32 = vld [vmem:[%s2846_s2 + $0x360] sm:$0xf0]  ;;  %v1783_v30 = vld [vmem:[%s2846_s2 + $0x3c8] sm:$0xf] }
  0x18   : > { %v1712_v33 = vor.u32 %v1917_v27, %v1711_v26  ;;  %v1423_v35 = vld [vmem:[%s2846_s2 + $0x100] sm:$0xf]  ;;  %v1716_v38 = vor.u32 %v1913_v31, %v1713_v32  ;;  %v1841_v40 = vld [vmem:[%s2846_s2 + $0x104] sm:$0xf]  ;;  %961 = vmatpush.bf16.msra.mxu0 %v1456_v29  ;;  %987 = vmatpush.bf16.msra.mxu2 %v1460_v34  ;;  %v1870_v29 = vld [vmem:[%s2846_s2 + $0x1e4] sm:$0xf0] }
  0x19   : > { %v1845_v36 = vld [vmem:[%s2846_s2 + $0x11c] sm:$0xf0]  ;;  %v1425_v41 = vld [vmem:[%s2846_s2 + $0x120] sm:$0xf0]  ;;  %v1934_v32 = vld [vmem:[%s2846_s2 + $0x3e4] sm:$0xf0] }
  0x1a   : > { %v1679_v37 = vld [vmem:[%s2846_s2 + $0x300] sm:$0xf]  ;;  %v1905_v42 = vld [vmem:[%s2846_s2 + $0x304] sm:$0xf]  ;;  %v1424_v44 = vor.u32 %v1845_v36, %v1423_v35  ;;  %974 = vmatpush.bf16.msra.mxu1 %v1712_v33  ;;  %v1428_v46 = vor.u32 %v1841_v40, %v1425_v41  ;;  %1000 = vmatpush.bf16.msra.mxu3 %v1716_v38  ;;  %v1866_v33 = vld [vmem:[%s2846_s2 + $0x1cc] sm:$0xf]  ;;  %v1528_v40 = vor.u32 %v1870_v29, %v1527_v28 }
  0x1b   : > { %v1909_v39 = vld [vmem:[%s2846_s2 + $0x31c] sm:$0xf0]  ;;  %v1681_v43 = vld [vmem:[%s2846_s2 + $0x320] sm:$0xf0]  ;;  %v1529_v34 = vld [vmem:[%s2846_s2 + $0x1e8] sm:$0xf0]  ;;  %v1784_v41 = vor.u32 %v1934_v32, %v1783_v30 }
  0x1c   : > { %v1680_v45 = vor.u32 %v1909_v39, %v1679_v37  ;;  %v1391_v47 = vld [vmem:[%s2846_s2 + $0xc0] sm:$0xf]  ;;  %v1684_v50 = vor.u32 %v1905_v42, %v1681_v43  ;;  %v1833_v52 = vld [vmem:[%s2846_s2 + $0xc4] sm:$0xf]  ;;  %962 = vmatpush.bf16.msra.mxu0 %v1424_v44  ;;  %988 = vmatpush.bf16.msra.mxu2 %v1428_v46  ;;  %v1930_v37 = vld [vmem:[%s2846_s2 + $0x3cc] sm:$0xf]  ;;  %v1532_v42 = vor.u32 %v1866_v33, %v1529_v34 }
  0x1d   : > { %v1837_v48 = vld [vmem:[%s2846_s2 + $0xdc] sm:$0xf0]  ;;  %v1393_v53 = vld [vmem:[%s2846_s2 + $0xe0] sm:$0xf0]  ;;  %v1785_v38 = vld [vmem:[%s2846_s2 + $0x3e8] sm:$0xf0] }
  0x1e   : > { %v1647_v49 = vld [vmem:[%s2846_s2 + $0x2c0] sm:$0xf]  ;;  %v1897_v54 = vld [vmem:[%s2846_s2 + $0x2c4] sm:$0xf]  ;;  %v1392_v56 = vor.u32 %v1837_v48, %v1391_v47  ;;  %975 = vmatpush.bf16.msra.mxu1 %v1680_v45  ;;  %v1396_v58 = vor.u32 %v1833_v52, %v1393_v53  ;;  %1001 = vmatpush.bf16.msra.mxu3 %v1684_v50  ;;  %v1495_v43 = vld [vmem:[%s2846_s2 + $0x188] sm:$0xf]  ;;  %v1788_v46 = vor.u32 %v1930_v37, %v1785_v38 }
  0x1f   : > { %v1901_v51 = vld [vmem:[%s2846_s2 + $0x2dc] sm:$0xf0]  ;;  %v1649_v55 = vld [vmem:[%s2846_s2 + $0x2e0] sm:$0xf0]  ;;  %v1862_v44 = vld [vmem:[%s2846_s2 + $0x1a4] sm:$0xf0] }
  0x20   : > { %v1648_v57 = vor.u32 %v1901_v51, %v1647_v49  ;;  %v1359_v59 = vld [vmem:[%s2846_s2 + $0x80] sm:$0xf]  ;;  %v1652_v62 = vor.u32 %v1897_v54, %v1649_v55  ;;  %v1825_v0 = vld [vmem:[%s2846_s2 + $0x84] sm:$0xf]  ;;  %963 = vmatpush.bf16.msra.mxu0 %v1392_v56  ;;  %989 = vmatpush.bf16.msra.mxu2 %v1396_v58  ;;  %v1751_v45 = vld [vmem:[%s2846_s2 + $0x388] sm:$0xf]  ;;  %v1496_v52 = vor.u32 %v1862_v44, %v1495_v43 }
  0x21   : > { %v1829_v60 = vld [vmem:[%s2846_s2 + $0x9c] sm:$0xf0]  ;;  %v1361_v1 = vld [vmem:[%s2846_s2 + $0xa0] sm:$0xf0]  ;;  %v1926_v47 = vld [vmem:[%s2846_s2 + $0x3a4] sm:$0xf0] }
  0x22   : > { %v1615_v61 = vld [vmem:[%s2846_s2 + $0x280] sm:$0xf]  ;;  %v1889_v2 = vld [vmem:[%s2846_s2 + $0x284] sm:$0xf]  ;;  %v1360_v4 = vor.u32 %v1829_v60, %v1359_v59  ;;  %976 = vmatpush.bf16.msra.mxu1 %v1648_v57  ;;  %v1364_v6 = vor.u32 %v1825_v0, %v1361_v1  ;;  %1002 = vmatpush.bf16.msra.mxu3 %v1652_v62  ;;  %v1858_v48 = vld [vmem:[%s2846_s2 + $0x18c] sm:$0xf]  ;;  %v1752_v53 = vor.u32 %v1926_v47, %v1751_v45 }
  0x23   : > { %v1893_v63 = vld [vmem:[%s2846_s2 + $0x29c] sm:$0xf0]  ;;  %v1617_v3 = vld [vmem:[%s2846_s2 + $0x2a0] sm:$0xf0]  ;;  %v1497_v49 = vld [vmem:[%s2846_s2 + $0x1a8] sm:$0xf0] }
  0x24   : > { %v1616_v5 = vor.u32 %v1893_v63, %v1615_v61  ;;  %v1327_v7 = vld [vmem:[%s2846_s2 + $0x40] sm:$0xf]  ;;  %v1620_v10 = vor.u32 %v1889_v2, %v1617_v3  ;;  %v1817_v12 = vld [vmem:[%s2846_s2 + $0x44] sm:$0xf]  ;;  %964 = vmatpush.bf16.msra.mxu0 %v1360_v4  ;;  %990 = vmatpush.bf16.msra.mxu2 %v1364_v6  ;;  %v1922_v50 = vld [vmem:[%s2846_s2 + $0x38c] sm:$0xf]  ;;  %v1500_v54 = vor.u32 %v1858_v48, %v1497_v49 }
  0x25   : > { %v1821_v8 = vld [vmem:[%s2846_s2 + $0x5c] sm:$0xf0]  ;;  %v1329_v13 = vld [vmem:[%s2846_s2 + $0x60] sm:$0xf0]  ;;  %v1753_v51 = vld [vmem:[%s2846_s2 + $0x3a8] sm:$0xf0] }
  0x26   : > { %v1583_v9 = vld [vmem:[%s2846_s2 + $0x240] sm:$0xf]  ;;  %v1881_v14 = vld [vmem:[%s2846_s2 + $0x244] sm:$0xf]  ;;  %v1328_v16 = vor.u32 %v1821_v8, %v1327_v7  ;;  %977 = vmatpush.bf16.msra.mxu1 %v1616_v5  ;;  %v1332_v20 = vor.u32 %v1817_v12, %v1329_v13  ;;  %1003 = vmatpush.bf16.msra.mxu3 %v1620_v10  ;;  %v1463_v55 = vld [vmem:[%s2846_s2 + $0x148] sm:$0xf]  ;;  %v1756_v58 = vor.u32 %v1922_v50, %v1753_v51 }
  0x27   : > { %v1885_v11 = vld [vmem:[%s2846_s2 + $0x25c] sm:$0xf0]  ;;  %v1585_v15 = vld [vmem:[%s2846_s2 + $0x260] sm:$0xf0]  ;;  %v1854_v56 = vld [vmem:[%s2846_s2 + $0x164] sm:$0xf0] }
  0x28   : > { %v1295_v17 = vld [vmem:[%s2846_s2] sm:$0xf]  ;;  %v1584_v19 = vor.u32 %v1885_v11, %v1583_v9  ;;  %v1809_v23 = vld [vmem:[%s2846_s2 + $0x4] sm:$0xf]  ;;  %v1588_v24 = vor.u32 %v1881_v14, %v1585_v15  ;;  %965 = vmatpush.bf16.msra.mxu0 %v1328_v16  ;;  %991 = vmatpush.bf16.msra.mxu2 %v1332_v20  ;;  %v1719_v57 = vld [vmem:[%s2846_s2 + $0x348] sm:$0xf]  ;;  %v1464_v0 = vor.u32 %v1854_v56, %v1463_v55 }
  0x29   : > { %v1813_v18 = vld [vmem:[%s2846_s2 + $0x1c] sm:$0xf0]  ;;  %v1297_v25 = vld [vmem:[%s2846_s2 + $0x20] sm:$0xf0]  ;;  %v1918_v59 = vld [vmem:[%s2846_s2 + $0x364] sm:$0xf0] }
  0x2a   : > { %v1551_v21 = vld [vmem:[%s2846_s2 + $0x200] sm:$0xf]  ;;  %v1873_v26 = vld [vmem:[%s2846_s2 + $0x204] sm:$0xf]  ;;  %v1296_v31 = vor.u32 %v1813_v18, %v1295_v17  ;;  %978 = vmatpush.bf16.msra.mxu1 %v1584_v19  ;;  %v1300_v36 = vor.u32 %v1809_v23, %v1297_v25  ;;  %1004 = vmatpush.bf16.msra.mxu3 %v1588_v24  ;;  %v1850_v60 = vld [vmem:[%s2846_s2 + $0x14c] sm:$0xf]  ;;  %v1720_v2 = vor.u32 %v1918_v59, %v1719_v57 }
  0x2b   : > { %v1877_v22 = vld [vmem:[%s2846_s2 + $0x21c] sm:$0xf0]  ;;  %v1553_v27 = vld [vmem:[%s2846_s2 + $0x220] sm:$0xf0]  ;;  %v1465_v61 = vld [vmem:[%s2846_s2 + $0x168] sm:$0xf0] }
  0x2c   : > { %v1552_v35 = vor.u32 %v1877_v22, %v1551_v21  ;;  %v1556_v39 = vor.u32 %v1873_v26, %v1553_v27  ;;  %966 = vmatpush.bf16.msra.mxu0 %v1296_v31  ;;  %992 = vmatpush.bf16.msra.mxu2 %v1300_v36  ;;  %v1914_v62 = vld [vmem:[%s2846_s2 + $0x34c] sm:$0xf]  ;;  %v1431_v1 = vld [vmem:[%s2846_s2 + $0x108] sm:$0xf]  ;;  %v1468_v3 = vor.u32 %v1850_v60, %v1465_v61  ;;  %v182_v22 = vld [vmem:[%s172_s26] sm:$0xff] }
  0x2d   : > { %v1721_v63 = vld [vmem:[%s2846_s2 + $0x368] sm:$0xf0]  ;;  %v1846_v4 = vld [vmem:[%s2846_s2 + $0x124] sm:$0xf0]  ;;  %184 = vst [vmem:[#allocation1] ss:$2 sm:$0xff] %v182_v22 }
  0x2e   : > { %979 = vmatpush.bf16.msra.mxu1 %v1552_v35  ;;  %1005 = vmatpush.bf16.msra.mxu3 %v1556_v39  ;;  %v1687_v5 = vld [vmem:[%s2846_s2 + $0x308] sm:$0xf]  ;;  %v1724_v7 = vor.u32 %v1914_v62, %v1721_v63  ;;  %v1842_v8 = vld [vmem:[%s2846_s2 + $0x10c] sm:$0xf]  ;;  %v1432_v12 = vor.u32 %v1846_v4, %v1431_v1  ;;  %v1535_v1 = vld [vmem:[%s2846_s2 + $0x1d0] sm:$0xf] }
  0x2f   : > { %v1910_v6 = vld [vmem:[%s2846_s2 + $0x324] sm:$0xf0]  ;;  %v1433_v9 = vld [vmem:[%s2846_s2 + $0x128] sm:$0xf0]  ;;  %v1505_v22 = vld [vmem:[%s2846_s2 + $0x1b0] sm:$0xf0] }
  0x30   : > { %1011 = vmatpush.bf16.msrb.mxu0 %v1528_v40  ;;  %1037 = vmatpush.bf16.msrb.mxu2 %v1532_v42  ;;  %v1906_v10 = vld [vmem:[%s2846_s2 + $0x30c] sm:$0xf]  ;;  %v1399_v13 = vld [vmem:[%s2846_s2 + $0xc8] sm:$0xf]  ;;  %v1688_v14 = vor.u32 %v1910_v6, %v1687_v5  ;;  %v1436_v15 = vor.u32 %v1842_v8, %v1433_v9  ;;  %v1935_v5 = vld [vmem:[%s2846_s2 + $0x3ec] sm:$0xf0] }
  0x31   : > { %v1689_v11 = vld [vmem:[%s2846_s2 + $0x328] sm:$0xf0]  ;;  %v1838_v16 = vld [vmem:[%s2846_s2 + $0xe4] sm:$0xf0]  ;;  %v1867_v6 = vld [vmem:[%s2846_s2 + $0x1d4] sm:$0xf] }
  0x32   : > { %1024 = vmatpush.bf16.msrb.mxu1 %v1784_v41  ;;  %1050 = vmatpush.bf16.msrb.mxu3 %v1788_v46  ;;  %v1655_v17 = vld [vmem:[%s2846_s2 + $0x2c8] sm:$0xf]  ;;  %v1692_v19 = vor.u32 %v1906_v10, %v1689_v11  ;;  %v1834_v20 = vld [vmem:[%s2846_s2 + $0xcc] sm:$0xf]  ;;  %v1400_v25 = vor.u32 %v1838_v16, %v1399_v13  ;;  %v1931_v10 = vld [vmem:[%s2846_s2 + $0x3d4] sm:$0xf] }
  0x33   : > { %v1902_v18 = vld [vmem:[%s2846_s2 + $0x2e4] sm:$0xf0]  ;;  %v1401_v21 = vld [vmem:[%s2846_s2 + $0xe8] sm:$0xf0]  ;;  %v1793_v11 = vld [vmem:[%s2846_s2 + $0x3f0] sm:$0xf0] }
  0x34   : > { %1012 = vmatpush.bf16.msrb.mxu0 %v1496_v52  ;;  %1038 = vmatpush.bf16.msrb.mxu2 %v1500_v54  ;;  %v1898_v23 = vld [vmem:[%s2846_s2 + $0x2cc] sm:$0xf]  ;;  %v1656_v26 = vor.u32 %v1902_v18, %v1655_v17  ;;  %v1404_v27 = vor.u32 %v1834_v20, %v1401_v21  ;;  %v1367_v28 = vld [vmem:[%s2846_s2 + $0x88] sm:$0xf]  ;;  %v1503_v16 = vld [vmem:[%s2846_s2 + $0x190] sm:$0xf] }
  0x35   : > { %v1657_v24 = vld [vmem:[%s2846_s2 + $0x2e8] sm:$0xf0]  ;;  %v1830_v29 = vld [vmem:[%s2846_s2 + $0xa4] sm:$0xf0]  ;;  %v1863_v17 = vld [vmem:[%s2846_s2 + $0x1ac] sm:$0xf0] }
  0x36   : > { %1025 = vmatpush.bf16.msrb.mxu1 %v1752_v53  ;;  %1051 = vmatpush.bf16.msrb.mxu3 %v1756_v58  ;;  %v1623_v30 = vld [vmem:[%s2846_s2 + $0x288] sm:$0xf]  ;;  %v1660_v31 = vor.u32 %v1898_v23, %v1657_v24  ;;  %v1826_v33 = vld [vmem:[%s2846_s2 + $0x8c] sm:$0xf]  ;;  %v1368_v37 = vor.u32 %v1830_v29, %v1367_v28  ;;  %v1759_v18 = vld [vmem:[%s2846_s2 + $0x390] sm:$0xf] }
  0x37   : > { %v1894_v32 = vld [vmem:[%s2846_s2 + $0x2a4] sm:$0xf0]  ;;  %v1369_v34 = vld [vmem:[%s2846_s2 + $0xa8] sm:$0xf0]  ;;  %v1927_v20 = vld [vmem:[%s2846_s2 + $0x3ac] sm:$0xf0] }
  0x38   : > { %1013 = vmatpush.bf16.msrb.mxu0 %v1464_v0  ;;  %1039 = vmatpush.bf16.msrb.mxu2 %v1468_v3  ;;  %v1890_v35 = vld [vmem:[%s2846_s2 + $0x28c] sm:$0xf]  ;;  %v1335_v38 = vld [vmem:[%s2846_s2 + $0x48] sm:$0xf]  ;;  %v1624_v41 = vor.u32 %v1894_v32, %v1623_v30  ;;  %v1372_v42 = vor.u32 %v1826_v33, %v1369_v34  ;;  %v1791_v3 = vld [vmem:[%s2846_s2 + $0x3d0] sm:$0xf] }
  0x39   : > { %v1625_v36 = vld [vmem:[%s2846_s2 + $0x2a8] sm:$0xf0]  ;;  %v1822_v39 = vld [vmem:[%s2846_s2 + $0x64] sm:$0xf0]  ;;  %v1859_v21 = vld [vmem:[%s2846_s2 + $0x194] sm:$0xf] }
  0x3a   : > { %1026 = vmatpush.bf16.msrb.mxu1 %v1720_v2  ;;  %1052 = vmatpush.bf16.msrb.mxu3 %v1724_v7  ;;  %v1591_v40 = vld [vmem:[%s2846_s2 + $0x248] sm:$0xf]  ;;  %v1818_v44 = vld [vmem:[%s2846_s2 + $0x4c] sm:$0xf]  ;;  %v1628_v46 = vor.u32 %v1890_v35, %v1625_v36  ;;  %v1336_v53 = vor.u32 %v1822_v39, %v1335_v38  ;;  %v1871_v2 = vld [vmem:[%s2846_s2 + $0x1ec] sm:$0xf0] }
  0x3b   : > { %v1886_v43 = vld [vmem:[%s2846_s2 + $0x264] sm:$0xf0]  ;;  %v1337_v45 = vld [vmem:[%s2846_s2 + $0x68] sm:$0xf0]  ;;  %v1537_v7 = vld [vmem:[%s2846_s2 + $0x1f0] sm:$0xf0]  ;;  %v1536_v13 = vor.u32 %v1871_v2, %v1535_v1 }
  0x3c   : > { %1014 = vmatpush.bf16.msrb.mxu0 %v1432_v12  ;;  %1040 = vmatpush.bf16.msrb.mxu2 %v1436_v15  ;;  %v185_v47 = vld.sshfl [vmem:[#allocation1] sm:$0xff pattern:$0x75316420]  ;;  %v186_v48 = vld.sshfl [vmem:[#allocation1 + $0x8] sm:$0xff pattern:$0x75316420]  ;;  %v1592_v56 = vor.u32 %v1886_v43, %v1591_v40  ;;  %v1340_v57 = vor.u32 %v1818_v44, %v1337_v45  ;;  %v1540_v15 = vor.u32 %v1867_v6, %v1537_v7 }
  0x3d   : > { %v2387_v49 = vpack.c.bf16 %v185_v47, %v185_v47  ;;  %v2389_v50 = vpack.c.bf16 %v186_v48, %v186_v48  ;;  %v1882_v51 = vld [vmem:[%s2846_s2 + $0x24c] sm:$0xf]  ;;  %v1303_v54 = vld [vmem:[%s2846_s2 + $0x8] sm:$0xf]  ;;  %v1923_v23 = vld [vmem:[%s2846_s2 + $0x394] sm:$0xf] }
  0x3e   : > { %1027 = vmatpush.bf16.msrb.mxu1 %v1688_v14  ;;  %1053 = vmatpush.bf16.msrb.mxu3 %v1692_v19  ;;  %v1593_v52 = vld [vmem:[%s2846_s2 + $0x268] sm:$0xf0]  ;;  %v1814_v55 = vld [vmem:[%s2846_s2 + $0x24] sm:$0xf0]  ;;  %v1792_v14 = vor.u32 %v1935_v5, %v1791_v3  ;;  %v1796_v19 = vor.u32 %v1931_v10, %v1793_v11  ;;  %v1761_v24 = vld [vmem:[%s2846_s2 + $0x3b0] sm:$0xf0] }
  0x3f   : > { %v1559_v58 = vld [vmem:[%s2846_s2 + $0x208] sm:$0xf]  ;;  %v1810_v60 = vld [vmem:[%s2846_s2 + $0xc] sm:$0xf]  ;;  %993 = vmatmul.bf16.vlgmr.msra.gmra.mxu2 %v2387_v49  ;;  %v1596_v61 = vor.u32 %v1882_v51, %v1593_v52  ;;  %1006 = vmatmul.bf16.vlgmr.msra.gmra.mxu3 %v2389_v50  ;;  %v1304_v4 = vor.u32 %v1814_v55, %v1303_v54  ;;  %v1471_v28 = vld [vmem:[%s2846_s2 + $0x150] sm:$0xf] }
  0x40   : > { %1015 = vmatpush.bf16.msrb.mxu0 %v1400_v25  ;;  %1041 = vmatpush.bf16.msrb.mxu2 %v1404_v27  ;;  %v1878_v59 = vld [vmem:[%s2846_s2 + $0x224] sm:$0xf0]  ;;  %v1305_v62 = vld [vmem:[%s2846_s2 + $0x28] sm:$0xf0]  ;;  %v1504_v25 = vor.u32 %v1863_v17, %v1503_v16  ;;  %v1508_v27 = vor.u32 %v1859_v21, %v1505_v22  ;;  %v1855_v29 = vld [vmem:[%s2846_s2 + $0x16c] sm:$0xf0] }
  0x41   : > { %v1874_v63 = vld [vmem:[%s2846_s2 + $0x20c] sm:$0xf]  ;;  %967 = vmatmul.bf16.vlgmr.msra.gmra.mxu0 %v2387_v49  ;;  %980 = vmatmul.bf16.vlgmr.msra.gmra.mxu1 %v2389_v50  ;;  %v1560_v8 = vor.u32 %v1878_v59, %v1559_v58  ;;  %v1308_v9 = vor.u32 %v1810_v60, %v1305_v62  ;;  %v1727_v30 = vld [vmem:[%s2846_s2 + $0x350] sm:$0xf]  ;;  %v1851_v33 = vld [vmem:[%s2846_s2 + $0x154] sm:$0xf] }
  0x42   : > { %1028 = vmatpush.bf16.msrb.mxu1 %v1656_v26  ;;  %1054 = vmatpush.bf16.msrb.mxu3 %v1660_v31  ;;  %v1561_v0 = vld [vmem:[%s2846_s2 + $0x228] sm:$0xf0]  ;;  %v1760_v26 = vor.u32 %v1927_v20, %v1759_v18  ;;  %v1764_v31 = vor.u32 %v1923_v23, %v1761_v24  ;;  %v1919_v32 = vld [vmem:[%s2846_s2 + $0x36c] sm:$0xf0]  ;;  %v1473_v34 = vld [vmem:[%s2846_s2 + $0x170] sm:$0xf0] }
  0x43   : > { %v1564_v12 = vor.u32 %v1874_v63, %v1561_v0  ;;  %v1915_v35 = vld [vmem:[%s2846_s2 + $0x354] sm:$0xf]  ;;  %v1728_v38 = vor.u32 %v1919_v32, %v1727_v30  ;;  %v1476_v39 = vor.u32 %v1851_v33, %v1473_v34  ;;  %v1439_v40 = vld [vmem:[%s2846_s2 + $0x110] sm:$0xf] }
  0x44   : > { %1016 = vmatpush.bf16.msrb.mxu0 %v1368_v37  ;;  %1042 = vmatpush.bf16.msrb.mxu2 %v1372_v42  ;;  %v1729_v36 = vld [vmem:[%s2846_s2 + $0x370] sm:$0xf0]  ;;  %v1472_v37 = vor.u32 %v1855_v29, %v1471_v28  ;;  %v1695_v42 = vld [vmem:[%s2846_s2 + $0x310] sm:$0xf] }
  0x45   : > { %v1732_v43 = vor.u32 %v1915_v35, %v1729_v36  ;;  %v1911_v44 = vld [vmem:[%s2846_s2 + $0x32c] sm:$0xf0]  ;;  %v1843_v45 = vld [vmem:[%s2846_s2 + $0x114] sm:$0xf]  ;;  %v1543_v35 = vld [vmem:[%s2846_s2 + $0x1d8] sm:$0xf] }
  0x46   : > { %1029 = vmatpush.bf16.msrb.mxu1 %v1624_v41  ;;  %1055 = vmatpush.bf16.msrb.mxu3 %v1628_v46  ;;  %v1847_v41 = vld [vmem:[%s2846_s2 + $0x12c] sm:$0xf0]  ;;  %v1441_v46 = vld [vmem:[%s2846_s2 + $0x130] sm:$0xf0]  ;;  %v1696_v52 = vor.u32 %v1911_v44, %v1695_v42  ;;  %v1872_v36 = vld [vmem:[%s2846_s2 + $0x1f4] sm:$0xf0] }
  0x47   : > { %v1907_v47 = vld [vmem:[%s2846_s2 + $0x314] sm:$0xf]  ;;  %v1440_v51 = vor.u32 %v1847_v41, %v1439_v40  ;;  %v1407_v54 = vld [vmem:[%s2846_s2 + $0xd0] sm:$0xf]  ;;  %v1868_v40 = vld [vmem:[%s2846_s2 + $0x1dc] sm:$0xf] }
  0x48   : > { %1017 = vmatpush.bf16.msrb.mxu0 %v1336_v53  ;;  %1043 = vmatpush.bf16.msrb.mxu2 %v1340_v57  ;;  %v1697_v48 = vld [vmem:[%s2846_s2 + $0x330] sm:$0xf0]  ;;  %v1444_v53 = vor.u32 %v1843_v45, %v1441_v46  ;;  %v1839_v55 = vld [vmem:[%s2846_s2 + $0xec] sm:$0xf0]  ;;  %v1545_v41 = vld [vmem:[%s2846_s2 + $0x1f8] sm:$0xf0] }
  0x49   : > { %v1700_v57 = vor.u32 %v1907_v47, %v1697_v48  ;;  %v1903_v58 = vld [vmem:[%s2846_s2 + $0x2ec] sm:$0xf0]  ;;  %v1835_v59 = vld [vmem:[%s2846_s2 + $0xd4] sm:$0xf]  ;;  %v1408_v63 = vor.u32 %v1839_v55, %v1407_v54  ;;  %v1932_v44 = vld [vmem:[%s2846_s2 + $0x3dc] sm:$0xf]  ;;  %v1544_v47 = vor.u32 %v1872_v36, %v1543_v35 }
  0x4a   : > { %1030 = vmatpush.bf16.msrb.mxu1 %v1592_v56  ;;  %1056 = vmatpush.bf16.msrb.mxu3 %v1596_v61  ;;  %v1663_v56 = vld [vmem:[%s2846_s2 + $0x2d0] sm:$0xf]  ;;  %v1409_v60 = vld [vmem:[%s2846_s2 + $0xf0] sm:$0xf0]  ;;  %v1801_v45 = vld [vmem:[%s2846_s2 + $0x3f8] sm:$0xf0] }
  0x4b   : > { %v1899_v61 = vld [vmem:[%s2846_s2 + $0x2d4] sm:$0xf]  ;;  %v1664_v0 = vor.u32 %v1903_v58, %v1663_v56  ;;  %v1412_v1 = vor.u32 %v1835_v59, %v1409_v60  ;;  %v1375_v2 = vld [vmem:[%s2846_s2 + $0x90] sm:$0xf]  ;;  %v1767_v54 = vld [vmem:[%s2846_s2 + $0x398] sm:$0xf]  ;;  %v1804_v55 = vor.u32 %v1932_v44, %v1801_v45 }
  0x4c   : > { %1018 = vmatpush.bf16.msrb.mxu0 %v1304_v4  ;;  %1044 = vmatpush.bf16.msrb.mxu2 %v1308_v9  ;;  %v1665_v62 = vld [vmem:[%s2846_s2 + $0x2f0] sm:$0xf0]  ;;  %v1831_v3 = vld [vmem:[%s2846_s2 + $0xac] sm:$0xf0]  ;;  %v1928_v56 = vld [vmem:[%s2846_s2 + $0x3b4] sm:$0xf0] }
  0x4d   : > { %v1631_v4 = vld [vmem:[%s2846_s2 + $0x290] sm:$0xf]  ;;  %v1668_v5 = vor.u32 %v1899_v61, %v1665_v62  ;;  %v1827_v7 = vld [vmem:[%s2846_s2 + $0x94] sm:$0xf]  ;;  %v1376_v11 = vor.u32 %v1831_v3, %v1375_v2  ;;  %v1513_v58 = vld [vmem:[%s2846_s2 + $0x1b8] sm:$0xf0]  ;;  %v1768_v62 = vor.u32 %v1928_v56, %v1767_v54 }
  0x4e   : > { %1031 = vmatpush.bf16.msrb.mxu1 %v1560_v8  ;;  %1057 = vmatpush.bf16.msrb.mxu3 %v1564_v12  ;;  %v1895_v6 = vld [vmem:[%s2846_s2 + $0x2ac] sm:$0xf0]  ;;  %v1377_v8 = vld [vmem:[%s2846_s2 + $0xb0] sm:$0xf0]  ;;  %v1924_v59 = vld [vmem:[%s2846_s2 + $0x39c] sm:$0xf] }
  0x4f   : > { %1045 = vmatmul.bf16.vlgmr.msrb.gmra.mxu2 %v2387_v49  ;;  %v1891_v9 = vld [vmem:[%s2846_s2 + $0x294] sm:$0xf]  ;;  %v1632_v12 = vor.u32 %v1895_v6, %v1631_v4  ;;  %v1599_v16 = vld [vmem:[%s2846_s2 + $0x250] sm:$0xf]  ;;  %v1769_v60 = vld [vmem:[%s2846_s2 + $0x3b8] sm:$0xf0] }
  0x50   : > { %1063 = vmatpush.bf16.msra.mxu0 %v1536_v13  ;;  %1089 = vmatpush.bf16.msra.mxu2 %v1540_v15  ;;  %v1633_v10 = vld [vmem:[%s2846_s2 + $0x2b0] sm:$0xf0]  ;;  %v1380_v13 = vor.u32 %v1827_v7, %v1377_v8  ;;  %v1823_v15 = vld [vmem:[%s2846_s2 + $0x6c] sm:$0xf0]  ;;  %v1735_v2 = vld [vmem:[%s2846_s2 + $0x358] sm:$0xf]  ;;  %v1772_v3 = vor.u32 %v1924_v59, %v1769_v60 }
  0x51   : > { %1019 = vmatmul.bf16.vlgmr.msrb.gmra.mxu0 %v2387_v49  ;;  %1058 = vmatmul.bf16.vlgmr.msrb.gmra.mxu3 %v2389_v50  ;;  %v1636_v17 = vor.u32 %v1891_v9, %v1633_v10  ;;  %v1887_v18 = vld [vmem:[%s2846_s2 + $0x26c] sm:$0xf0]  ;;  %v1345_v20 = vld [vmem:[%s2846_s2 + $0x70] sm:$0xf0]  ;;  %v1920_v4 = vld [vmem:[%s2846_s2 + $0x374] sm:$0xf0] }
  0x52   : > { %1076 = vmatpush.bf16.msra.mxu1 %v1792_v14  ;;  %1102 = vmatpush.bf16.msra.mxu3 %v1796_v19  ;;  %v1343_v14 = vld [vmem:[%s2846_s2 + $0x50] sm:$0xf]  ;;  %v1819_v19 = vld [vmem:[%s2846_s2 + $0x54] sm:$0xf]  ;;  %v1481_v6 = vld [vmem:[%s2846_s2 + $0x178] sm:$0xf0]  ;;  %v1736_v10 = vor.u32 %v1920_v4, %v1735_v2 }
  0x53   : > { %1032 = vmatmul.bf16.vlgmr.msrb.gmra.mxu1 %v2389_v50  ;;  %v1883_v21 = vld [vmem:[%s2846_s2 + $0x254] sm:$0xf]  ;;  %v1344_v23 = vor.u32 %v1823_v15, %v1343_v14  ;;  %v1311_v24 = vld [vmem:[%s2846_s2 + $0x10] sm:$0xf]  ;;  %v1916_v7 = vld [vmem:[%s2846_s2 + $0x35c] sm:$0xf] }
  0x54   : > { %1064 = vmatpush.bf16.msra.mxu0 %v1504_v25  ;;  %1090 = vmatpush.bf16.msra.mxu2 %v1508_v27  ;;  %v1601_v22 = vld [vmem:[%s2846_s2 + $0x270] sm:$0xf0]  ;;  %v1815_v25 = vld [vmem:[%s2846_s2 + $0x2c] sm:$0xf0]  ;;  %v1348_v27 = vor.u32 %v1819_v19, %v1345_v20  ;;  %v1737_v8 = vld [vmem:[%s2846_s2 + $0x378] sm:$0xf0] }
  0x55   : > { %v1567_v28 = vld [vmem:[%s2846_s2 + $0x210] sm:$0xf]  ;;  %v1811_v30 = vld [vmem:[%s2846_s2 + $0x14] sm:$0xf]  ;;  %v1703_v14 = vld [vmem:[%s2846_s2 + $0x318] sm:$0xf]  ;;  %v1740_v15 = vor.u32 %v1916_v7, %v1737_v8 }
  0x56   : > { %1077 = vmatpush.bf16.msra.mxu1 %v1760_v26  ;;  %1103 = vmatpush.bf16.msra.mxu3 %v1764_v31  ;;  %v1600_v26 = vor.u32 %v1887_v18, %v1599_v16  ;;  %v1879_v29 = vld [vmem:[%s2846_s2 + $0x22c] sm:$0xf0]  ;;  %v1604_v31 = vor.u32 %v1883_v21, %v1601_v22  ;;  %v1313_v32 = vld [vmem:[%s2846_s2 + $0x30] sm:$0xf0]  ;;  %v1912_v16 = vld [vmem:[%s2846_s2 + $0x334] sm:$0xf0] }
  0x57   : > { %v1875_v33 = vld [vmem:[%s2846_s2 + $0x214] sm:$0xf]  ;;  %v1568_v42 = vor.u32 %v1879_v29, %v1567_v28  ;;  %v1449_v18 = vld [vmem:[%s2846_s2 + $0x138] sm:$0xf0]  ;;  %v1704_v22 = vor.u32 %v1912_v16, %v1703_v14  ;;  %v1904_v28 = vld [vmem:[%s2846_s2 + $0x2f4] sm:$0xf0] }
  0x58   : > { %1065 = vmatpush.bf16.msra.mxu0 %v1472_v37  ;;  %1091 = vmatpush.bf16.msra.mxu2 %v1476_v39  ;;  %v1569_v34 = vld [vmem:[%s2846_s2 + $0x230] sm:$0xf0]  ;;  %v1799_v37 = vld [vmem:[%s2846_s2 + $0x3d8] sm:$0xf]  ;;  %v1908_v19 = vld [vmem:[%s2846_s2 + $0x31c] sm:$0xf] }
  0x59   : > { %v1936_v39 = vld [vmem:[%s2846_s2 + $0x3f4] sm:$0xf0]  ;;  %v1572_v46 = vor.u32 %v1875_v33, %v1569_v34  ;;  %v1705_v20 = vld [vmem:[%s2846_s2 + $0x338] sm:$0xf0] }
  0x5a   : > { %1078 = vmatpush.bf16.msra.mxu1 %v1728_v38  ;;  %1104 = vmatpush.bf16.msra.mxu3 %v1732_v43  ;;  %v1312_v38 = vor.u32 %v1815_v25, %v1311_v24  ;;  %v1316_v43 = vor.u32 %v1811_v30, %v1313_v32  ;;  %v1800_v48 = vor.u32 %v1936_v39, %v1799_v37  ;;  %v1415_v24 = vld [vmem:[%s2846_s2 + $0xd8] sm:$0xf]  ;;  %v1836_v29 = vld [vmem:[%s2846_s2 + $0xdc] sm:$0xf] }
  0x5b   : > { %v1840_v25 = vld [vmem:[%s2846_s2 + $0xf4] sm:$0xf0]  ;;  %v1417_v30 = vld [vmem:[%s2846_s2 + $0xf8] sm:$0xf0] }
  0x5c   : > { %1066 = vmatpush.bf16.msra.mxu0 %v1440_v51  ;;  %1092 = vmatpush.bf16.msra.mxu2 %v1444_v53  ;;  %v1548_v51 = vor.u32 %v1868_v40, %v1545_v41  ;;  %v1864_v53 = vld [vmem:[%s2846_s2 + $0x1b4] sm:$0xf0]  ;;  %v1673_v32 = vld [vmem:[%s2846_s2 + $0x2f8] sm:$0xf0]  ;;  %v1416_v33 = vor.u32 %v1840_v25, %v1415_v24  ;;  %v1420_v35 = vor.u32 %v1836_v29, %v1417_v30 }
  0x5d   : > { %v1383_v36 = vld [vmem:[%s2846_s2 + $0x98] sm:$0xf]  ;;  %v1828_v41 = vld [vmem:[%s2846_s2 + $0x9c] sm:$0xf] }
  0x5e   : > { %1079 = vmatpush.bf16.msra.mxu1 %v1696_v52  ;;  %1105 = vmatpush.bf16.msra.mxu3 %v1700_v57  ;;  %v1511_v52 = vld [vmem:[%s2846_s2 + $0x198] sm:$0xf]  ;;  %v1860_v57 = vld [vmem:[%s2846_s2 + $0x19c] sm:$0xf] }
  0x5f   : > { %v1512_v61 = vor.u32 %v1864_v53, %v1511_v52  ;;  %v1832_v37 = vld [vmem:[%s2846_s2 + $0xb4] sm:$0xf0]  ;;  %v1641_v44 = vld [vmem:[%s2846_s2 + $0x2b8] sm:$0xf0] }
  0x60   : > { %1067 = vmatpush.bf16.msra.mxu0 %v1408_v63  ;;  %1093 = vmatpush.bf16.msra.mxu2 %v1412_v1  ;;  %v1516_v63 = vor.u32 %v1860_v57, %v1513_v58  ;;  %v1856_v1 = vld [vmem:[%s2846_s2 + $0x174] sm:$0xf0]  ;;  %v1384_v45 = vor.u32 %v1832_v37, %v1383_v36  ;;  %v1353_v56 = vld [vmem:[%s2846_s2 + $0x78] sm:$0xf0] }
  0x61   : > { %v1896_v40 = vld [vmem:[%s2846_s2 + $0x2b4] sm:$0xf0]  ;;  %v1884_v57 = vld [vmem:[%s2846_s2 + $0x25c] sm:$0xf] }
  0x62   : > { %1080 = vmatpush.bf16.msra.mxu1 %v1664_v0  ;;  %1106 = vmatpush.bf16.msra.mxu3 %v1668_v5  ;;  %v1479_v0 = vld [vmem:[%s2846_s2 + $0x158] sm:$0xf]  ;;  %v1852_v5 = vld [vmem:[%s2846_s2 + $0x15c] sm:$0xf] }
  0x63   : > { %v1480_v9 = vor.u32 %v1856_v1, %v1479_v0  ;;  %v1607_v52 = vld [vmem:[%s2846_s2 + $0x258] sm:$0xf]  ;;  %v1609_v58 = vld [vmem:[%s2846_s2 + $0x278] sm:$0xf0] }
  0x64   : > { %1068 = vmatpush.bf16.msra.mxu0 %v1376_v11  ;;  %1094 = vmatpush.bf16.msra.mxu2 %v1380_v13  ;;  %v1484_v11 = vor.u32 %v1852_v5, %v1481_v6  ;;  %v1848_v13 = vld [vmem:[%s2846_s2 + $0x134] sm:$0xf0]  ;;  %v1612_v1 = vor.u32 %v1884_v57, %v1609_v58  ;;  %v1321_v4 = vld [vmem:[%s2846_s2 + $0x38] sm:$0xf0] }
  0x65   : > { %v1888_v54 = vld [vmem:[%s2846_s2 + $0x274] sm:$0xf0]  ;;  %v1876_v5 = vld [vmem:[%s2846_s2 + $0x21c] sm:$0xf] }
  0x66   : > { %1081 = vmatpush.bf16.msra.mxu1 %v1632_v12  ;;  %1107 = vmatpush.bf16.msra.mxu3 %v1636_v17  ;;  %v1447_v12 = vld [vmem:[%s2846_s2 + $0x118] sm:$0xf]  ;;  %v1844_v17 = vld [vmem:[%s2846_s2 + $0x11c] sm:$0xf]  ;;  %v1608_v60 = vor.u32 %v1888_v54, %v1607_v52 }
  0x67   : > { %v1448_v21 = vor.u32 %v1848_v13, %v1447_v12  ;;  %v1575_v0 = vld [vmem:[%s2846_s2 + $0x218] sm:$0xf]  ;;  %v1577_v6 = vld [vmem:[%s2846_s2 + $0x238] sm:$0xf0] }
  0x68   : > { %1069 = vmatpush.bf16.msra.mxu0 %v1344_v23  ;;  %1095 = vmatpush.bf16.msra.mxu2 %v1348_v27  ;;  %v1452_v23 = vor.u32 %v1844_v17, %v1449_v18  ;;  %v1708_v27 = vor.u32 %v1908_v19, %v1705_v20  ;;  %v1880_v2 = vld [vmem:[%s2846_s2 + $0x234] sm:$0xf0] }
  0x69   : > { %v1576_v8 = vor.u32 %v1880_v2, %v1575_v0 }
  0x6a   : > { %1082 = vmatpush.bf16.msra.mxu1 %v1600_v26  ;;  %1108 = vmatpush.bf16.msra.mxu3 %v1604_v31  ;;  %v1671_v26 = vld [vmem:[%s2846_s2 + $0x2d8] sm:$0xf]  ;;  %v1900_v31 = vld [vmem:[%s2846_s2 + $0x2dc] sm:$0xf] }
  0x6b   : > { %v1672_v34 = vor.u32 %v1904_v28, %v1671_v26  ;;  %v1676_v39 = vor.u32 %v1900_v31, %v1673_v32 }
  0x6c   : > { %1070 = vmatpush.bf16.msra.mxu0 %v1312_v38  ;;  %1096 = vmatpush.bf16.msra.mxu2 %v1316_v43  ;;  %v1639_v38 = vld [vmem:[%s2846_s2 + $0x298] sm:$0xf]  ;;  %v1892_v43 = vld [vmem:[%s2846_s2 + $0x29c] sm:$0xf] }
  0x6d   : > { %v1644_v53 = vor.u32 %v1892_v43, %v1641_v44 }
  0x6e   : > { %1083 = vmatpush.bf16.msra.mxu1 %v1568_v42  ;;  %1109 = vmatpush.bf16.msra.mxu3 %v1572_v46  ;;  %v1385_v42 = vld [vmem:[%s2846_s2 + $0xb8] sm:$0xf0]  ;;  %v1640_v46 = vor.u32 %v1896_v40, %v1639_v38 }
  0x6f   : > { %1097 = vmatmul.bf16.vlgmr.msra.gmra.mxu2 %v2387_v49  ;;  %1071 = vmatmul.bf16.vlgmr.msra.gmra.mxu0 %v2387_v49 }
  0x70   : > { %1115 = vmatpush.bf16.msrb.mxu0 %v1544_v47  ;;  %1141 = vmatpush.bf16.msrb.mxu2 %v1548_v51  ;;  %v1388_v47 = vor.u32 %v1828_v41, %v1385_v42  ;;  %v1824_v51 = vld [vmem:[%s2846_s2 + $0x74] sm:$0xf0] }
  0x71   : > { %1110 = vmatmul.bf16.vlgmr.msra.gmra.mxu3 %v2389_v50  ;;  %1084 = vmatmul.bf16.vlgmr.msra.gmra.mxu1 %v2389_v50 }
  0x72   : > { %1128 = vmatpush.bf16.msrb.mxu1 %v1800_v48  ;;  %1154 = vmatpush.bf16.msrb.mxu3 %v1804_v55  ;;  %v1351_v48 = vld [vmem:[%s2846_s2 + $0x58] sm:$0xf]  ;;  %v1820_v55 = vld [vmem:[%s2846_s2 + $0x5c] sm:$0xf] }
  0x73   : > { %v1352_v59 = vor.u32 %v1824_v51, %v1351_v48 }
  0x74   : > { %1116 = vmatpush.bf16.msrb.mxu0 %v1512_v61  ;;  %1142 = vmatpush.bf16.msrb.mxu2 %v1516_v63  ;;  %v1356_v61 = vor.u32 %v1820_v55, %v1353_v56  ;;  %v1816_v63 = vld [vmem:[%s2846_s2 + $0x34] sm:$0xf0] }
  0x76   : > { %1129 = vmatpush.bf16.msrb.mxu1 %v1768_v62  ;;  %1155 = vmatpush.bf16.msrb.mxu3 %v1772_v3  ;;  %v1319_v62 = vld [vmem:[%s2846_s2 + $0x18] sm:$0xf]  ;;  %v1812_v3 = vld [vmem:[%s2846_s2 + $0x1c] sm:$0xf] }
  0x77   : > { %v1320_v7 = vor.u32 %v1816_v63, %v1319_v62 }
  0x78   : > { %1117 = vmatpush.bf16.msrb.mxu0 %v1480_v9  ;;  %1143 = vmatpush.bf16.msrb.mxu2 %v1484_v11  ;;  %v1324_v9 = vor.u32 %v1812_v3, %v1321_v4 }
  0x7a   : > { %1130 = vmatpush.bf16.msrb.mxu1 %v1736_v10  ;;  %1156 = vmatpush.bf16.msrb.mxu3 %v1740_v15  ;;  %v1580_v10 = vor.u32 %v1876_v5, %v1577_v6 }
  0x7c   : > { %1118 = vmatpush.bf16.msrb.mxu0 %v1448_v21  ;;  %1144 = vmatpush.bf16.msrb.mxu2 %v1452_v23 }
  0x7e   : > { %1131 = vmatpush.bf16.msrb.mxu1 %v1704_v22  ;;  %1157 = vmatpush.bf16.msrb.mxu3 %v1708_v27 }
  0x80   : > { %1119 = vmatpush.bf16.msrb.mxu0 %v1416_v33  ;;  %1145 = vmatpush.bf16.msrb.mxu2 %v1420_v35 }
  0x82   : > { %1132 = vmatpush.bf16.msrb.mxu1 %v1672_v34  ;;  %1158 = vmatpush.bf16.msrb.mxu3 %v1676_v39 }
  0x84   : > { %1120 = vmatpush.bf16.msrb.mxu0 %v1384_v45  ;;  %1146 = vmatpush.bf16.msrb.mxu2 %v1388_v47 }
  0x86   : > { %1133 = vmatpush.bf16.msrb.mxu1 %v1640_v46  ;;  %1159 = vmatpush.bf16.msrb.mxu3 %v1644_v53 }
  0x88   : > { %1121 = vmatpush.bf16.msrb.mxu0 %v1352_v59  ;;  %1147 = vmatpush.bf16.msrb.mxu2 %v1356_v61 }
  0x8a   : > { %1134 = vmatpush.bf16.msrb.mxu1 %v1608_v60  ;;  %1160 = vmatpush.bf16.msrb.mxu3 %v1612_v1 }
  0x8c   : > { %1122 = vmatpush.bf16.msrb.mxu0 %v1320_v7  ;;  %1148 = vmatpush.bf16.msrb.mxu2 %v1324_v9 }
  0x8e   : > { %1135 = vmatpush.bf16.msrb.mxu1 %v1576_v8  ;;  %1161 = vmatpush.bf16.msrb.mxu3 %v1580_v10 }
  0x8f   : > { %1123 = vmatmul.bf16.vlgmr.msrb.gmra.mxu0 %v2387_v49  ;;  %1149 = vmatmul.bf16.vlgmr.msrb.gmra.mxu2 %v2387_v49 }
  0x91   : > { %1136 = vmatmul.bf16.vlgmr.msrb.gmra.mxu1 %v2389_v50  ;;  %1162 = vmatmul.bf16.vlgmr.msrb.gmra.mxu3 %v2389_v50 }
  0xbe   : > { %v968_v11 = vpop.f32.mrf.mxu0  ;;  %v981_v12 = vpop.f32.mrf.mxu1 }
  0xbf   : > { %v982_v15 = vadd.f32 %v981_v12, %v968_v11 }
  0xc2   : > { %v994_v13 = vpop.f32.mrf.mxu2  ;;  %v1007_v14 = vpop.f32.mrf.mxu3 }
  0xc3   : > { %v1008_v16 = vadd.f32 %v1007_v14, %v994_v13 }
  0xc5   : > { %v1175_v18 = vrot.slane %v1008_v16, 4 }
  0xc6   : > { %v970_v17 = vpop.f32.mrf.mxu0  ;;  %v983_v19 = vpop.f32.mrf.mxu1 }
  0xc7   : > { %v1180_v49 = vsel %vm1179_vm0, %v982_v15, %v1175_v18 }
  0xc8   : > { %1188 = vst [vmem:[%s2825_s30] sm:$0xff] %v1180_v49 }
  0xca   : > { %v996_v50 = vpop.f32.mrf.mxu2  ;;  %v1009_v20 = vpop.f32.mrf.mxu3 }
  0xce   : > { %v1020_v21 = vpop.f32.mrf.mxu0 }
  0xd0   : > { %v1033_v22 = vpop.f32.mrf.mxu1 }
  0xd1   : > { %v1034_v25 = vadd.f32 %v1033_v22, %v1020_v21 }
  0xd2   : > { %v1046_v23 = vpop.f32.mrf.mxu2 }
  0xd4   : > { %v1059_v24 = vpop.f32.mrf.mxu3 }
  0xd5   : > { %v1060_v26 = vadd.f32 %v1059_v24, %v1046_v23 }
  0xd6   : > { %v1022_v27 = vpop.f32.mrf.mxu0 }
  0xd7   : > { %v1176_v29 = vrot.slane %v1060_v26, 4 }
  0xd8   : > { %v1035_v28 = vpop.f32.mrf.mxu1 }
  0xd9   : > { %v1181_v30 = vsel %vm1179_vm0, %v1034_v25, %v1176_v29 }
  0xda   : > { %v1048_v31 = vpop.f32.mrf.mxu2  ;;  %1189 = vst [vmem:[%s2825_s30 + $0x8] sm:$0xff] %v1181_v30 }
  0xdc   : > { %v1061_v32 = vpop.f32.mrf.mxu3 }
  0xec   : > { %v1072_v33 = vpop.f32.mrf.mxu0 }
  0xee   : > { %v1085_v34 = vpop.f32.mrf.mxu1 }
  0xef   : > { %v1086_v37 = vadd.f32 %v1085_v34, %v1072_v33 }
  0xf2   : > { %v1098_v35 = vpop.f32.mrf.mxu2 }
  0xf4   : > { %v1111_v36 = vpop.f32.mrf.mxu3  ;;  %v1074_v39 = vpop.f32.mrf.mxu0 }
  0xf5   : > { %v1112_v38 = vadd.f32 %v1111_v36, %v1098_v35 }
  0xf6   : > { %v1087_v41 = vpop.f32.mrf.mxu1 }
  0xf7   : > { %v1177_v40 = vrot.slane %v1112_v38, 4 }
  0xf9   : > { %v1182_v42 = vsel %vm1179_vm0, %v1086_v37, %v1177_v40 }
  0xfa   : > { %1190 = vst [vmem:[%s2825_s30 + $0x10] sm:$0xff] %v1182_v42  ;;  %v1100_v43 = vpop.f32.mrf.mxu2 }
  0xfc   : > { %v1113_v44 = vpop.f32.mrf.mxu3 }
 0x10c   : > { %v1124_v45 = vpop.f32.mrf.mxu0 }
 0x10e   : > { %v1137_v46 = vpop.f32.mrf.mxu1 }
 0x10f   : > { %v1138_v54 = vadd.f32 %v1137_v46, %v1124_v45 }
 0x112   : > { %v1150_v47 = vpop.f32.mrf.mxu2 }
 0x114   : > { %v1163_v48 = vpop.f32.mrf.mxu3  ;;  %v1126_v51 = vpop.f32.mrf.mxu0 }
 0x115   : > { %v1164_v52 = vadd.f32 %v1163_v48, %v1150_v47 }
 0x116   : > { %v1139_v53 = vpop.f32.mrf.mxu1 }
 0x117   : > { %v1178_v55 = vrot.slane %v1164_v52, 4 }
 0x119   : > { %v1183_v56 = vsel %vm1179_vm0, %v1138_v54, %v1178_v55 }
 0x11a   : > { %1191 = vst [vmem:[%s2825_s30 + $0x18] sm:$0xff] %v1183_v56  ;;  %v1152_v57 = vpop.f32.mrf.mxu2 }
 0x11c   : > { %v1165_v58 = vpop.f32.mrf.mxu3 }
 0x11d PF: > { %s14_s14 = sadd.s32 1, %s1983_s14   ;;  %s2848_s12 = smov %s1979_s13 }
 0x11e   : > { %p11_p5 = scmp.ge.s32.totalorder %s14_s14, 4   ;;  %s2849_s13 = smov %s2851_s0 }
 0x120   :  { %13 = sbr.rel (!%p11_p5) target bundleno = 2 (0x2), region = 58 }

</bundles_post_ra>
